<compile_context>
chip_gen: v5e
topology: v5e:2x2
jax: 0.10.0
libtpu: 0.0.40
codegen_flags: <defaults>
</compile_context>

<pallas_src>
import functools

import jax
import jax.numpy as jnp
import numpy as np
from jax.experimental import pallas as pl
from jax.experimental.pallas import tpu as pltpu

EPS = 1e-5
LANE = 128


def _round_up(v, m):
    return (v + m - 1) // m * m


def _cdiv(a, b):
    return (a + b - 1) // b


def _vmem_capacity_bytes():
    try:
        info = pltpu.get_tpu_info()
        cap = getattr(info, "vmem_capacity_bytes", None)
        if cap:
            return int(cap)
    except Exception:
        pass
    return 64 * 1024 * 1024


# ---------------------------------------------------------------------------
# Pass 1: per-channel sum / sum-of-squares over (batch, time).
# Grid = (n_split, n_half): leading axis "parallel" (both v7x TCs stream x),
# trailing axis "arbitrary" (per-core accumulation in a lane-aligned scratch).
# The cross-lane reduction + narrow (Cin, 2) store happen once per core.
# ---------------------------------------------------------------------------
def _bn_stats_kernel(x_ref, stat_ref, acc_ref, *, lane_groups):
    t = pl.program_id(1)

    @pl.when(t == 0)
    def _init():
        acc_ref[...] = jnp.zeros_like(acc_ref)

    x = x_ref[...].astype(jnp.float32)               # [B, Cin, T_BLK]
    s = jnp.sum(x, axis=0)                           # [Cin, T_BLK]
    q = jnp.sum(x * x, axis=0)                       # [Cin, T_BLK]

    ssum = acc_ref[0]                                # [Cin, 128]
    qsum = acc_ref[1]
    for g in range(lane_groups):                     # whole-vreg VPU adds
        lo = g * LANE
        ssum = ssum + s[:, lo:lo + LANE]
        qsum = qsum + q[:, lo:lo + LANE]
    acc_ref[0] = ssum
    acc_ref[1] = qsum

    @pl.when(t == pl.num_programs(1) - 1)
    def _fin():
        stat_ref[0] = jnp.concatenate(
            [jnp.sum(acc_ref[0], axis=1, keepdims=True),
             jnp.sum(acc_ref[1], axis=1, keepdims=True)], axis=1)


# ---------------------------------------------------------------------------
# Pass 2: gated dilated conv + fused 1x1 heads + residual adds, one
# (batch, time) tile per grid step.  The dilated taps are built in registers
# from the current tile + a narrow halo tile (no staging scratch); the
# BatchNorm affine is folded into the gate weights/biases; all matmuls run
# with bf16 operands and f32 accumulation.
# ---------------------------------------------------------------------------
def _wavenet_conv_kernel(xc_ref, xh_ref, res_ref,
                         wg_ref, bg_ref, wo_ref, bo_ref, sc_ref, sh_ref,
                         xout_ref, resout_ref,
                         *, dilation, k_taps, cout, pad_left):
    xc = xc_ref[0]                                   # [Cin, T_BLK]   bf16
    xh = xh_ref[0]                                   # [Cin, H_LANES] bf16

    shift_cache = {}

    def shifted(off):
        # x columns [tile_start + off, tile_start + off + T_BLK), bf16.
        if off not in shift_cache:
            if off == 0:
                shift_cache[off] = xc
            else:
                shift_cache[off] = jnp.concatenate(
                    [xc[:, off:], xh[:, :off]], axis=1)
        return shift_cache[off]

    # Gate pre-activation: per-tap bf16 matmuls accumulated in f32.  The BN
    # affine is already folded into wg/bg, so raw (bf16) x feeds the MXU.
    acc = None
    for k in range(k_taps):
        part = jnp.dot(wg_ref[k], shifted(k * dilation),
                       preferred_element_type=jnp.float32)
        acc = part if acc is None else acc + part
    acc = acc + bg_ref[...]                          # [2*Cout, T_BLK]
    gate = jnp.tanh(acc[:cout]) * jax.nn.sigmoid(acc[cout:])   # [Cout, T_BLK]

    # Fused 1x1 lin + res heads (single bf16 matmul, f32 accumulation).
    out = jnp.dot(wo_ref[...], gate.astype(wo_ref.dtype),
                  preferred_element_type=jnp.float32) + bo_ref[...]

    # Normalized, centre-cropped input for the skip connection.
    xn_crop = (shifted(pad_left).astype(jnp.float32) * sc_ref[...]
               + sh_ref[...])

    xout_ref[0] = xn_crop + out[:cout]
    resout_ref[0] = res_ref[0] + out[cout:]


def wavenet_conv(x, res, params, *, dilation, t_blk=None):
    """WaveNetConv forward.  x: [B, Cin, T], res: [B, R, T]."""
    B, Cin, T = x.shape
    w_tanh = params["w_tanh"]
    Cout, _, K = w_tanh.shape
    R = params["w_res"].shape[0]
    halo = dilation * (K - 1)
    T_out = T - halo
    assert T_out > 0
    assert Cin == Cout, "residual add requires num_features_in == num_features_out"
    pad_left = halo // 2                     # module's centre-crop (left side)

    # Narrow halo block (multiple of 128 lanes); t_blk must be a multiple of it.
    h_lanes = _round_up(max(halo, 1), LANE)

    # -------------------- VMEM budget / tile sizing --------------------
    def vmem_bytes(tb):
        p2 = 2 * (Cin * tb * 2               # x main tile (bf16), dbl-buffered
                  + Cin * h_lanes * 2        # x halo tile (bf16)
                  + R * tb * 4               # res tile (f32)
                  + Cout * tb * 4            # x_out tile (f32)
                  + R * tb * 4)              # res_out tile (f32)
        wgt = 2 * (K * 2 * Cout * Cin * 2 + (Cout + R) * Cout * 2
                   + (2 * Cout + Cout + R + 2 * Cin) * 4)
        p1 = 2 * (B * Cin * tb * 2) + 2 * Cin * LANE * 4 + Cin * 2 * 4
        return max(p1, p2 + wgt)

    cap = _vmem_capacity_bytes()
    # Leave headroom: <=48 MiB on 64-MiB chips (v7x), <=96 MiB on 128-MiB chips.
    limit_cap = max(32 << 20, min(cap * 3 // 4, cap - (16 << 20)))
    if t_blk is None:
        t_blk = 2048 if cap >= (96 << 20) else 1024
    t_blk = min(_round_up(max(t_blk, h_lanes), h_lanes),
                _round_up(T_out, h_lanes))
    while t_blk > h_lanes and vmem_bytes(t_blk) + (4 << 20) > limit_cap:
        t_blk -= h_lanes
    assert t_blk % h_lanes == 0 and halo <= h_lanes <= t_blk
    vmem_limit = int(min(limit_cap, max(32 << 20, 2 * vmem_bytes(t_blk))))

    n_tiles = _cdiv(T_out, t_blk)
    t_out_pad = n_tiles * t_blk

    # Pass-1 tiling: only real (non-halo-pad) tiles; 2-way split when possible
    # so both v7x TensorCores stream x.
    n1 = _cdiv(T, t_blk)
    n_split = 2 if n1 >= 2 else 1
    n_half = _cdiv(n1, n_split)

    # x padded once (combined with the bf16 cast) so the halo block and the
    # split pass-1 grid never read out of bounds; zero padding does not
    # perturb the BN sums and padded output columns are cropped below.
    x_len = max(n_tiles + 1, n_split * n_half) * t_blk
    x_p = jnp.pad(x.astype(jnp.bfloat16), ((0, 0), (0, 0), (0, x_len - T)))
    res_c = jnp.pad(res.astype(jnp.float32)[:, :, pad_left:pad_left + T_out],
                    ((0, 0), (0, 0), (0, t_out_pad - T_out)))

    # ---------------- pass 1: BatchNorm batch statistics ----------------
    stats_parts = pl.pallas_call(
        functools.partial(_bn_stats_kernel, lane_groups=t_blk // LANE),
        out_shape=jax.ShapeDtypeStruct((n_split, Cin, 2), jnp.float32),
        grid_spec=pltpu.PrefetchScalarGridSpec(
            num_scalar_prefetch=0,
            grid=(n_split, n_half),
            in_specs=[pl.BlockSpec((B, Cin, t_blk),
                                   lambda c, t: (0, 0, c * n_half + t))],
            out_specs=pl.BlockSpec((1, Cin, 2), lambda c, t: (c, 0, 0)),
            scratch_shapes=[pltpu.VMEM((2, Cin, LANE), jnp.float32)]),
        compiler_params=pltpu.CompilerParams(
            dimension_semantics=("parallel", "arbitrary"),
            vmem_limit_bytes=vmem_limit),
    )(x_p)
    stats = jnp.sum(stats_parts, axis=0)                          # [Cin, 2]

    n = B * T
    mean = stats[:, 0] / n
    var = stats[:, 1] / n - mean * mean
    scale = params["gamma"].astype(jnp.float32) * jax.lax.rsqrt(var + EPS)
    shift = params["beta"].astype(jnp.float32) - mean * scale

    # ---- fold BN affine into the dilated-conv weights; fuse the branches ----
    def fold(w, b):                          # w: [Cout, Cin, K], b: [Cout]
        w = w.astype(jnp.float32)
        wf = jnp.transpose(w * scale[None, :, None], (2, 0, 1))   # [K, Cout, Cin]
        bf = b.astype(jnp.float32) + jnp.einsum("ock,c->o", w, shift)
        return wf, bf

    wt, bt = fold(params["w_tanh"], params["b_tanh"])
    ws, bs = fold(params["w_sig"], params["b_sig"])
    w_gate = jnp.concatenate([wt, ws], axis=1).astype(jnp.bfloat16)  # [K,2Cout,Cin]
    b_gate = jnp.concatenate([bt, bs], axis=0)[:, None]              # [2Cout,1] f32
    w_out = jnp.concatenate(
        [params["w_lin"][:, :, 0], params["w_res"][:, :, 0]],
        axis=0).astype(jnp.bfloat16)                                 # [Cout+R,Cout]
    b_out = jnp.concatenate(
        [params["b_lin"], params["b_res"]],
        axis=0).astype(jnp.float32)[:, None]                         # [Cout+R,1]

    kernel = functools.partial(
        _wavenet_conv_kernel, dilation=dilation, k_taps=K, cout=Cout,
        pad_left=pad_left)

    hpb = t_blk // h_lanes
    c2 = lambda b, t: (0, 0)                 # VMEM-resident weights/biases
    c3 = lambda b, t: (0, 0, 0)

    # ---------------- pass 2: gated conv + heads + residual adds ----------------
    x_out, res_out = pl.pallas_call(
        kernel,
        out_shape=(jax.ShapeDtypeStruct((B, Cout, t_out_pad), jnp.float32),
                   jax.ShapeDtypeStruct((B, R, t_out_pad), jnp.float32)),
        grid_spec=pltpu.PrefetchScalarGridSpec(
            num_scalar_prefetch=0,
            grid=(B, n_tiles),
            in_specs=[
                pl.BlockSpec((1, Cin, t_blk), lambda b, t: (b, 0, t)),       # x tile
                pl.BlockSpec((1, Cin, h_lanes),
                             lambda b, t: (b, 0, (t + 1) * hpb)),            # halo
                pl.BlockSpec((1, R, t_blk), lambda b, t: (b, 0, t)),         # res
                pl.BlockSpec((K, 2 * Cout, Cin), c3),                        # gate W
                pl.BlockSpec((2 * Cout, 1), c2),                             # gate b
                pl.BlockSpec((Cout + R, Cout), c2),                          # head W
                pl.BlockSpec((Cout + R, 1), c2),                             # head b
                pl.BlockSpec((Cin, 1), c2),                                  # BN scale
                pl.BlockSpec((Cin, 1), c2),                                  # BN shift
            ],
            out_specs=[pl.BlockSpec((1, Cout, t_blk), lambda b, t: (b, 0, t)),
                       pl.BlockSpec((1, R, t_blk), lambda b, t: (b, 0, t))]),
        compiler_params=pltpu.CompilerParams(
            dimension_semantics=("parallel", "parallel"),   # megacore on v7x
            vmem_limit_bytes=vmem_limit),
    )(x_p, x_p, res_c, w_gate, b_gate, w_out, b_out,
      scale[:, None], shift[:, None])

    return x_out[:, :, :T_out], res_out[:, :, :T_out]


def reference(x, res, params, dilation):
    """Pure-JAX fp32 reference matching the PyTorch module (training-mode BN)."""
    x = x.astype(jnp.float32)
    mean = jnp.mean(x, axis=(0, 2), keepdims=True)
    var = jnp.mean((x - mean) ** 2, axis=(0, 2), keepdims=True)
    xn = (x - mean) / jnp.sqrt(var + EPS)
    xn = xn * params["gamma"][None, :, None] + params["beta"][None, :, None]

    def conv1d(inp, w, b, dil):
        out = jax.lax.conv_general_dilated(
            inp, w, window_strides=(1,), padding="VALID", rhs_dilation=(dil,),
            dimension_numbers=("NCH", "OIH", "NCH"),
            precision=jax.lax.Precision.HIGHEST)
        return out + b[None, :, None]

    t = jnp.tanh(conv1d(xn, params["w_tanh"], params["b_tanh"], dilation))
    s = jax.nn.sigmoid(conv1d(xn, params["w_sig"], params["b_sig"], dilation))
    g = t * s
    x_res = conv1d(g, params["w_res"], params["b_res"], dilation)
    x_lin = conv1d(g, params["w_lin"], params["b_lin"], dilation)
    T, T_out = x.shape[-1], x_lin.shape[-1]
    if T_out != T:
        p = (T - T_out) // 2
        return xn[:, :, p:p + T_out] + x_lin, res[:, :, p:p + T_out] + x_res
    return xn + x_lin, res + x_res


if __name__ == "__main__":
    B, Cin, Cout, R, K, DIL, T = 2, 8, 8, 16, 3, 2, 64

    key = jax.random.PRNGKey(0)
    ks = jax.random.split(key, 12)
    x = jax.random.normal(ks[0], (B, Cin, T), jnp.float32)
    res = jax.random.normal(ks[1], (B, R, T), jnp.float32)
    params = dict(
        w_tanh=0.3 * jax.random.normal(ks[2], (Cout, Cin, K), jnp.float32),
        b_tanh=0.1 * jax.random.normal(ks[3], (Cout,), jnp.float32),
        w_sig=0.3 * jax.random.normal(ks[4], (Cout, Cin, K), jnp.float32),
        b_sig=0.1 * jax.random.normal(ks[5], (Cout,), jnp.float32),
        w_lin=0.3 * jax.random.normal(ks[6], (Cout, Cout, 1), jnp.float32),
        b_lin=0.1 * jax.random.normal(ks[7], (Cout,), jnp.float32),
        w_res=0.3 * jax.random.normal(ks[8], (R, Cout, 1), jnp.float32),
        b_res=0.1 * jax.random.normal(ks[9], (R,), jnp.float32),
        gamma=1.0 + 0.1 * jax.random.normal(ks[10], (Cin,), jnp.float32),
        beta=0.1 * jax.random.normal(ks[11], (Cin,), jnp.float32),
    )

    fn = jax.jit(functools.partial(wavenet_conv, dilation=DIL))
    x_out, res_out = jax.block_until_ready(fn(x, res, params))

    x_ref, r_ref = reference(x, res, params, DIL)
    # Tolerance accounts for bf16 x I/O and bf16 MXU operands (f32 accumulation)
    # compared against an fp32 / Precision.HIGHEST reference.
    np.testing.assert_allclose(np.asarray(x_out), np.asarray(x_ref),
                               rtol=5e-2, atol=5e-2)
    np.testing.assert_allclose(np.asarray(res_out), np.asarray(r_ref),
                               rtol=5e-2, atol=5e-2)

    assert x_out.shape == (B, Cout, T - DIL * (K - 1))
    assert res_out.shape == (B, R, T - DIL * (K - 1))
    print("KERNEL_OK")
</pallas_src>

<mosaic_0001>
module attributes {stable_mosaic.version = 11 : i64} {
  func.func @_bn_stats_kernel(%arg0: i32, %arg1: i32, %arg2: memref<2x8x128xbf16, #tpu.memory_space<vmem>>, %arg3: memref<1x8x2xf32, #tpu.memory_space<vmem>>, %arg4: memref<2x8x128xf32, #tpu.memory_space<vmem>>) attributes {dimension_semantics = [#tpu.dimension_semantics<parallel>, #tpu.dimension_semantics<arbitrary>], iteration_bounds = array<i64: 1, 1>, scalar_prefetch = 0 : i64, scratch_operands = 1 : i64, tpu.core_type = #tpu.core_type<tc>, window_params = [{transform_indices = @transform_0, window_bounds = array<i64: 2, 8, 128>}, {transform_indices = @transform_1, window_bounds = array<i64: 1, 8, 2>}]} {
    %c0_i32 = arith.constant 0 : i32
    %0 = arith.cmpi eq, %arg1, %c0_i32 : i32
    %1 = arith.extui %0 : i1 to i32
    %c0_i32_0 = arith.constant 0 : i32
    %2 = arith.cmpi ne, %1, %c0_i32_0 : i32
    scf.if %2 {
      %cst_17 = arith.constant 0.000000e+00 : f32
      %23 = vector.broadcast %cst_17 : f32 to vector<2x8x128xf32>
      %c0_18 = arith.constant 0 : index
      %c0_19 = arith.constant 0 : index
      %c0_20 = arith.constant 0 : index
      %24 = vector.load %arg4[%c0_18, %c0_19, %c0_20] : memref<2x8x128xf32, #tpu.memory_space<vmem>>, vector<2x8x128xf32>
      tpu.vector_store %arg4[%c0_18, %c0_19, %c0_20], %23 {strides = array<i32>} : memref<2x8x128xf32, #tpu.memory_space<vmem>>, vector<2x8x128xf32>,
    } else {
    }
    %c0 = arith.constant 0 : index
    %c0_1 = arith.constant 0 : index
    %c0_2 = arith.constant 0 : index
    %3 = vector.load %arg2[%c0, %c0_1, %c0_2] : memref<2x8x128xbf16, #tpu.memory_space<vmem>>, vector<2x8x128xbf16>
    %4 = arith.extf %3 : vector<2x8x128xbf16> to vector<2x8x128xf32>
    %cst = arith.constant dense<0.000000e+00> : vector<8x128xf32>
    %5 = vector.multi_reduction <add>, %4, %cst [0] : vector<2x8x128xf32> to vector<8x128xf32>
    %6 = arith.mulf %4, %4 : vector<2x8x128xf32>
    %cst_3 = arith.constant dense<0.000000e+00> : vector<8x128xf32>
    %7 = vector.multi_reduction <add>, %6, %cst_3 [0] : vector<2x8x128xf32> to vector<8x128xf32>
    %c0_4 = arith.constant 0 : index
    %c0_5 = arith.constant 0 : index
    %c0_6 = arith.constant 0 : index
    %8 = vector.load %arg4[%c0_4, %c0_5, %c0_6] : memref<2x8x128xf32, #tpu.memory_space<vmem>>, vector<1x8x128xf32>
    %9 = vector.shape_cast %8 : vector<1x8x128xf32> to vector<8x128xf32>
    %c1 = arith.constant 1 : index
    %c0_7 = arith.constant 0 : index
    %c0_8 = arith.constant 0 : index
    %10 = vector.load %arg4[%c1, %c0_7, %c0_8] : memref<2x8x128xf32, #tpu.memory_space<vmem>>, vector<1x8x128xf32>
    %11 = vector.shape_cast %10 : vector<1x8x128xf32> to vector<8x128xf32>
    %12 = arith.addf %9, %5 : vector<8x128xf32>
    %13 = arith.addf %11, %7 : vector<8x128xf32>
    %c0_9 = arith.constant 0 : index
    %c0_10 = arith.constant 0 : index
    %c0_11 = arith.constant 0 : index
    %14 = vector.load %arg4[%c0_9, %c0_10, %c0_11] : memref<2x8x128xf32, #tpu.memory_space<vmem>>, vector<1x8x128xf32>
    %15 = vector.shape_cast %14 : vector<1x8x128xf32> to vector<8x128xf32>
    %16 = vector.shape_cast %12 : vector<8x128xf32> to vector<1x8x128xf32>
    tpu.vector_store %arg4[%c0_9, %c0_10, %c0_11], %16 {strides = array<i32>} : memref<2x8x128xf32, #tpu.memory_space<vmem>>, vector<1x8x128xf32>,
    %c1_12 = arith.constant 1 : index
    %c0_13 = arith.constant 0 : index
    %c0_14 = arith.constant 0 : index
    %17 = vector.load %arg4[%c1_12, %c0_13, %c0_14] : memref<2x8x128xf32, #tpu.memory_space<vmem>>, vector<1x8x128xf32>
    %18 = vector.shape_cast %17 : vector<1x8x128xf32> to vector<8x128xf32>
    %19 = vector.shape_cast %13 : vector<8x128xf32> to vector<1x8x128xf32>
    tpu.vector_store %arg4[%c1_12, %c0_13, %c0_14], %19 {strides = array<i32>} : memref<2x8x128xf32, #tpu.memory_space<vmem>>, vector<1x8x128xf32>,
    %c0_i32_15 = arith.constant 0 : i32
    %20 = arith.cmpi eq, %arg1, %c0_i32_15 : i32
    %21 = arith.extui %20 : i1 to i32
    %c0_i32_16 = arith.constant 0 : i32
    %22 = arith.cmpi ne, %21, %c0_i32_16 : i32
    scf.if %22 {
      %c0_17 = arith.constant 0 : index
      %c0_18 = arith.constant 0 : index
      %c0_19 = arith.constant 0 : index
      %23 = vector.load %arg4[%c0_17, %c0_18, %c0_19] : memref<2x8x128xf32, #tpu.memory_space<vmem>>, vector<1x8x128xf32>
      %24 = vector.shape_cast %23 : vector<1x8x128xf32> to vector<8x128xf32>
      %cst_20 = arith.constant dense<0.000000e+00> : vector<8xf32>
      %25 = vector.multi_reduction <add>, %24, %cst_20 [1] : vector<8x128xf32> to vector<8xf32>
      %26 = vector.shape_cast %25 : vector<8xf32> to vector<8x1xf32>
      %c1_21 = arith.constant 1 : index
      %c0_22 = arith.constant 0 : index
      %c0_23 = arith.constant 0 : index
      %27 = vector.load %arg4[%c1_21, %c0_22, %c0_23] : memref<2x8x128xf32, #tpu.memory_space<vmem>>, vector<1x8x128xf32>
      %28 = vector.shape_cast %27 : vector<1x8x128xf32> to vector<8x128xf32>
      %cst_24 = arith.constant dense<0.000000e+00> : vector<8xf32>
      %29 = vector.multi_reduction <add>, %28, %cst_24 [1] : vector<8x128xf32> to vector<8xf32>
      %30 = vector.shape_cast %29 : vector<8xf32> to vector<8x1xf32>
      %31 = tpu.concatenate %26, %30 in 1 : vector<8x1xf32>, vector<8x1xf32> -> vector<8x2xf32>
      %c0_25 = arith.constant 0 : index
      %c0_26 = arith.constant 0 : index
      %c0_27 = arith.constant 0 : index
      %32 = vector.load %arg3[%c0_25, %c0_26, %c0_27] : memref<1x8x2xf32, #tpu.memory_space<vmem>>, vector<1x8x2xf32>
      %33 = vector.shape_cast %32 : vector<1x8x2xf32> to vector<8x2xf32>
      %34 = vector.shape_cast %31 : vector<8x2xf32> to vector<1x8x2xf32>
      tpu.vector_store %arg3[%c0_25, %c0_26, %c0_27], %34 {strides = array<i32>} : memref<1x8x2xf32, #tpu.memory_space<vmem>>, vector<1x8x2xf32>,
    } else {
    }
    return
  }
  func.func @transform_0(%arg0: i32, %arg1: i32) -> (i32, i32, i32) {
    %c1_i32 = arith.constant 1 : i32
    %0 = arith.muli %arg0, %c1_i32 : i32
    %1 = arith.addi %0, %arg1 : i32
    %c0_i32 = arith.constant 0 : i32
    %c0_i32_0 = arith.constant 0 : i32
    %c0_i32_1 = arith.constant 0 : i32
    return %c0_i32, %c0_i32_0, %1 : i32, i32, i32
  }
  func.func @transform_1(%arg0: i32, %arg1: i32) -> (i32, i32, i32) {
    %c0_i32 = arith.constant 0 : i32
    %c0_i32_0 = arith.constant 0 : i32
    %c0_i32_1 = arith.constant 0 : i32
    return %arg0, %c0_i32, %c0_i32_0 : i32, i32, i32
  }
}

module attributes {stable_mosaic.version = 11 : i64} {
  func.func @_wavenet_conv_kernel(%arg0: i32, %arg1: i32, %arg2: memref<1x8x128xbf16, #tpu.memory_space<vmem>>, %arg3: memref<1x8x128xbf16, #tpu.memory_space<vmem>>, %arg4: memref<1x16x128xf32, #tpu.memory_space<vmem>>, %arg5: memref<3x16x8xbf16, #tpu.memory_space<vmem>>, %arg6: memref<16x1xf32, #tpu.memory_space<vmem>>, %arg7: memref<24x8xbf16, #tpu.memory_space<vmem>>, %arg8: memref<24x1xf32, #tpu.memory_space<vmem>>, %arg9: memref<8x1xf32, #tpu.memory_space<vmem>>, %arg10: memref<8x1xf32, #tpu.memory_space<vmem>>, %arg11: memref<1x8x128xf32, #tpu.memory_space<vmem>>, %arg12: memref<1x16x128xf32, #tpu.memory_space<vmem>>) attributes {dimension_semantics = [#tpu.dimension_semantics<parallel>, #tpu.dimension_semantics<parallel>], iteration_bounds = array<i64: 2, 1>, scalar_prefetch = 0 : i64, scratch_operands = 0 : i64, tpu.core_type = #tpu.core_type<tc>, window_params = [{transform_indices = @transform_0, window_bounds = array<i64: 1, 8, 128>}, {transform_indices = @transform_1, window_bounds = array<i64: 1, 8, 128>}, {transform_indices = @transform_2, window_bounds = array<i64: 1, 16, 128>}, {pipeline_mode = #tpu.pipeline_mode<synchronous>, transform_indices = @transform_3, window_bounds = array<i64: 3, 16, 8>}, {pipeline_mode = #tpu.pipeline_mode<synchronous>, transform_indices = @transform_4, window_bounds = array<i64: 16, 1>}, {pipeline_mode = #tpu.pipeline_mode<synchronous>, transform_indices = @transform_5, window_bounds = array<i64: 24, 8>}, {pipeline_mode = #tpu.pipeline_mode<synchronous>, transform_indices = @transform_6, window_bounds = array<i64: 24, 1>}, {pipeline_mode = #tpu.pipeline_mode<synchronous>, transform_indices = @transform_7, window_bounds = array<i64: 8, 1>}, {pipeline_mode = #tpu.pipeline_mode<synchronous>, transform_indices = @transform_8, window_bounds = array<i64: 8, 1>}, {transform_indices = @transform_9, window_bounds = array<i64: 1, 8, 128>}, {transform_indices = @transform_10, window_bounds = array<i64: 1, 16, 128>}]} {
    %c0 = arith.constant 0 : index
    %c0_0 = arith.constant 0 : index
    %c0_1 = arith.constant 0 : index
    %0 = vector.load %arg2[%c0, %c0_0, %c0_1] : memref<1x8x128xbf16, #tpu.memory_space<vmem>>, vector<1x8x128xbf16>
    %1 = vector.shape_cast %0 : vector<1x8x128xbf16> to vector<8x128xbf16>
    %c0_2 = arith.constant 0 : index
    %c0_3 = arith.constant 0 : index
    %c0_4 = arith.constant 0 : index
    %2 = vector.load %arg3[%c0_2, %c0_3, %c0_4] : memref<1x8x128xbf16, #tpu.memory_space<vmem>>, vector<1x8x128xbf16>
    %3 = vector.shape_cast %2 : vector<1x8x128xbf16> to vector<8x128xbf16>
    %c0_5 = arith.constant 0 : index
    %c0_6 = arith.constant 0 : index
    %c0_7 = arith.constant 0 : index
    %4 = vector.load %arg5[%c0_5, %c0_6, %c0_7] : memref<3x16x8xbf16, #tpu.memory_space<vmem>>, vector<1x16x8xbf16>
    %5 = vector.shape_cast %4 : vector<1x16x8xbf16> to vector<16x8xbf16>
    %cst = arith.constant dense<0.000000e+00> : vector<16x128xf32>
    %6 = tpu.matmul %5, %1, %cst {dimension_numbers = #tpu.dot_dimension_numbers<[1], [0], [0], [1], [0, 0, 1, 1], [], []>} : vector<16x8xbf16>, vector<8x128xbf16>, vector<16x128xf32> -> vector<16x128xf32>
    %c1 = arith.constant 1 : index
    %c0_8 = arith.constant 0 : index
    %c0_9 = arith.constant 0 : index
    %7 = vector.load %arg5[%c1, %c0_8, %c0_9] : memref<3x16x8xbf16, #tpu.memory_space<vmem>>, vector<1x16x8xbf16>
    %8 = vector.shape_cast %7 : vector<1x16x8xbf16> to vector<16x8xbf16>
    %9 = vector.extract_strided_slice %1 {offsets = [0, 2], sizes = [8, 126], strides = [1, 1]} : vector<8x128xbf16> to vector<8x126xbf16>
    %10 = vector.extract_strided_slice %3 {offsets = [0, 0], sizes = [8, 2], strides = [1, 1]} : vector<8x128xbf16> to vector<8x2xbf16>
    %11 = tpu.concatenate %9, %10 in 1 : vector<8x126xbf16>, vector<8x2xbf16> -> vector<8x128xbf16>
    %cst_10 = arith.constant dense<0.000000e+00> : vector<16x128xf32>
    %12 = tpu.matmul %8, %11, %cst_10 {dimension_numbers = #tpu.dot_dimension_numbers<[1], [0], [0], [1], [0, 0, 1, 1], [], []>} : vector<16x8xbf16>, vector<8x128xbf16>, vector<16x128xf32> -> vector<16x128xf32>
    %13 = arith.addf %6, %12 : vector<16x128xf32>
    %c2 = arith.constant 2 : index
    %c0_11 = arith.constant 0 : index
    %c0_12 = arith.constant 0 : index
    %14 = vector.load %arg5[%c2, %c0_11, %c0_12] : memref<3x16x8xbf16, #tpu.memory_space<vmem>>, vector<1x16x8xbf16>
    %15 = vector.shape_cast %14 : vector<1x16x8xbf16> to vector<16x8xbf16>
    %16 = vector.extract_strided_slice %1 {offsets = [0, 4], sizes = [8, 124], strides = [1, 1]} : vector<8x128xbf16> to vector<8x124xbf16>
    %17 = vector.extract_strided_slice %3 {offsets = [0, 0], sizes = [8, 4], strides = [1, 1]} : vector<8x128xbf16> to vector<8x4xbf16>
    %18 = tpu.concatenate %16, %17 in 1 : vector<8x124xbf16>, vector<8x4xbf16> -> vector<8x128xbf16>
    %cst_13 = arith.constant dense<0.000000e+00> : vector<16x128xf32>
    %19 = tpu.matmul %15, %18, %cst_13 {dimension_numbers = #tpu.dot_dimension_numbers<[1], [0], [0], [1], [0, 0, 1, 1], [], []>} : vector<16x8xbf16>, vector<8x128xbf16>, vector<16x128xf32> -> vector<16x128xf32>
    %20 = arith.addf %13, %19 : vector<16x128xf32>
    %c0_14 = arith.constant 0 : index
    %c0_15 = arith.constant 0 : index
    %21 = vector.load %arg6[%c0_14, %c0_15] : memref<16x1xf32, #tpu.memory_space<vmem>>, vector<16x1xf32>
    %22 = vector.broadcast %21 : vector<16x1xf32> to vector<16x128xf32>
    %23 = arith.addf %20, %22 : vector<16x128xf32>
    %24 = vector.extract_strided_slice %23 {offsets = [0, 0], sizes = [8, 128], strides = [1, 1]} : vector<16x128xf32> to vector<8x128xf32>
    %25 = math.tanh %24 : vector<8x128xf32>
    %26 = vector.extract_strided_slice %23 {offsets = [8, 0], sizes = [8, 128], strides = [1, 1]} : vector<16x128xf32> to vector<8x128xf32>
    %27 = arith.negf %26 : vector<8x128xf32>
    %28 = math.exp %27 : vector<8x128xf32>
    %cst_16 = arith.constant 1.000000e+00 : f32
    %29 = vector.broadcast %cst_16 : f32 to vector<8x128xf32>
    %30 = arith.addf %29, %28 : vector<8x128xf32>
    %31 = arith.divf %29, %30 : vector<8x128xf32>
    %32 = arith.mulf %25, %31 : vector<8x128xf32>
    %c0_17 = arith.constant 0 : index
    %c0_18 = arith.constant 0 : index
    %33 = vector.load %arg7[%c0_17, %c0_18] : memref<24x8xbf16, #tpu.memory_space<vmem>>, vector<24x8xbf16>
    %34 = arith.truncf %32 : vector<8x128xf32> to vector<8x128xbf16>
    %cst_19 = arith.constant dense<0.000000e+00> : vector<24x128xf32>
    %35 = tpu.matmul %33, %34, %cst_19 {dimension_numbers = #tpu.dot_dimension_numbers<[1], [0], [0], [1], [0, 0, 1, 1], [], []>} : vector<24x8xbf16>, vector<8x128xbf16>, vector<24x128xf32> -> vector<24x128xf32>
    %c0_20 = arith.constant 0 : index
    %c0_21 = arith.constant 0 : index
    %36 = vector.load %arg8[%c0_20, %c0_21] : memref<24x1xf32, #tpu.memory_space<vmem>>, vector<24x1xf32>
    %37 = vector.broadcast %36 : vector<24x1xf32> to vector<24x128xf32>
    %38 = arith.addf %35, %37 : vector<24x128xf32>
    %39 = arith.extf %11 : vector<8x128xbf16> to vector<8x128xf32>
    %c0_22 = arith.constant 0 : index
    %c0_23 = arith.constant 0 : index
    %40 = vector.load %arg9[%c0_22, %c0_23] : memref<8x1xf32, #tpu.memory_space<vmem>>, vector<8x1xf32>
    %41 = vector.broadcast %40 : vector<8x1xf32> to vector<8x128xf32>
    %42 = arith.mulf %39, %41 : vector<8x128xf32>
    %c0_24 = arith.constant 0 : index
    %c0_25 = arith.constant 0 : index
    %43 = vector.load %arg10[%c0_24, %c0_25] : memref<8x1xf32, #tpu.memory_space<vmem>>, vector<8x1xf32>
    %44 = vector.broadcast %43 : vector<8x1xf32> to vector<8x128xf32>
    %45 = arith.addf %42, %44 : vector<8x128xf32>
    %46 = vector.extract_strided_slice %38 {offsets = [0, 0], sizes = [8, 128], strides = [1, 1]} : vector<24x128xf32> to vector<8x128xf32>
    %47 = arith.addf %45, %46 : vector<8x128xf32>
    %c0_26 = arith.constant 0 : index
    %c0_27 = arith.constant 0 : index
    %c0_28 = arith.constant 0 : index
    %48 = vector.load %arg11[%c0_26, %c0_27, %c0_28] : memref<1x8x128xf32, #tpu.memory_space<vmem>>, vector<1x8x128xf32>
    %49 = vector.shape_cast %48 : vector<1x8x128xf32> to vector<8x128xf32>
    %50 = vector.shape_cast %47 : vector<8x128xf32> to vector<1x8x128xf32>
    tpu.vector_store %arg11[%c0_26, %c0_27, %c0_28], %50 {strides = array<i32>} : memref<1x8x128xf32, #tpu.memory_space<vmem>>, vector<1x8x128xf32>,
    %c0_29 = arith.constant 0 : index
    %c0_30 = arith.constant 0 : index
    %c0_31 = arith.constant 0 : index
    %51 = vector.load %arg4[%c0_29, %c0_30, %c0_31] : memref<1x16x128xf32, #tpu.memory_space<vmem>>, vector<1x16x128xf32>
    %52 = vector.shape_cast %51 : vector<1x16x128xf32> to vector<16x128xf32>
    %53 = vector.extract_strided_slice %38 {offsets = [8, 0], sizes = [16, 128], strides = [1, 1]} : vector<24x128xf32> to vector<16x128xf32>
    %54 = arith.addf %52, %53 : vector<16x128xf32>
    %c0_32 = arith.constant 0 : index
    %c0_33 = arith.constant 0 : index
    %c0_34 = arith.constant 0 : index
    %55 = vector.load %arg12[%c0_32, %c0_33, %c0_34] : memref<1x16x128xf32, #tpu.memory_space<vmem>>, vector<1x16x128xf32>
    %56 = vector.shape_cast %55 : vector<1x16x128xf32> to vector<16x128xf32>
    %57 = vector.shape_cast %54 : vector<16x128xf32> to vector<1x16x128xf32>
    tpu.vector_store %arg12[%c0_32, %c0_33, %c0_34], %57 {strides = array<i32>} : memref<1x16x128xf32, #tpu.memory_space<vmem>>, vector<1x16x128xf32>,
    return
  }
  func.func @transform_0(%arg0: i32, %arg1: i32) -> (i32, i32, i32) {
    %c0_i32 = arith.constant 0 : i32
    %c0_i32_0 = arith.constant 0 : i32
    return %arg0, %c0_i32, %arg1 : i32, i32, i32
  }
  func.func @transform_1(%arg0: i32, %arg1: i32) -> (i32, i32, i32) {
    %c1_i32 = arith.constant 1 : i32
    %0 = arith.addi %arg1, %c1_i32 : i32
    %c1_i32_0 = arith.constant 1 : i32
    %1 = arith.muli %0, %c1_i32_0 : i32
    %c0_i32 = arith.constant 0 : i32
    %c0_i32_1 = arith.constant 0 : i32
    return %arg0, %c0_i32, %1 : i32, i32, i32
  }
  func.func @transform_2(%arg0: i32, %arg1: i32) -> (i32, i32, i32) {
    %c0_i32 = arith.constant 0 : i32
    %c0_i32_0 = arith.constant 0 : i32
    return %arg0, %c0_i32, %arg1 : i32, i32, i32
  }
  func.func @transform_3(%arg0: i32, %arg1: i32) -> (i32, i32, i32) {
    %c0_i32 = arith.constant 0 : i32
    %c0_i32_0 = arith.constant 0 : i32
    %c0_i32_1 = arith.constant 0 : i32
    %c0_i32_2 = arith.constant 0 : i32
    return %c0_i32, %c0_i32_0, %c0_i32_1 : i32, i32, i32
  }
  func.func @transform_4(%arg0: i32, %arg1: i32) -> (i32, i32) {
    %c0_i32 = arith.constant 0 : i32
    %c0_i32_0 = arith.constant 0 : i32
    %c0_i32_1 = arith.constant 0 : i32
    return %c0_i32, %c0_i32_0 : i32, i32
  }
  func.func @transform_5(%arg0: i32, %arg1: i32) -> (i32, i32) {
    %c0_i32 = arith.constant 0 : i32
    %c0_i32_0 = arith.constant 0 : i32
    %c0_i32_1 = arith.constant 0 : i32
    return %c0_i32, %c0_i32_0 : i32, i32
  }
  func.func @transform_6(%arg0: i32, %arg1: i32) -> (i32, i32) {
    %c0_i32 = arith.constant 0 : i32
    %c0_i32_0 = arith.constant 0 : i32
    %c0_i32_1 = arith.constant 0 : i32
    return %c0_i32, %c0_i32_0 : i32, i32
  }
  func.func @transform_7(%arg0: i32, %arg1: i32) -> (i32, i32) {
    %c0_i32 = arith.constant 0 : i32
    %c0_i32_0 = arith.constant 0 : i32
    %c0_i32_1 = arith.constant 0 : i32
    return %c0_i32, %c0_i32_0 : i32, i32
  }
  func.func @transform_8(%arg0: i32, %arg1: i32) -> (i32, i32) {
    %c0_i32 = arith.constant 0 : i32
    %c0_i32_0 = arith.constant 0 : i32
    %c0_i32_1 = arith.constant 0 : i32
    return %c0_i32, %c0_i32_0 : i32, i32
  }
  func.func @transform_9(%arg0: i32, %arg1: i32) -> (i32, i32, i32) {
    %c0_i32 = arith.constant 0 : i32
    %c0_i32_0 = arith.constant 0 : i32
    return %arg0, %c0_i32, %arg1 : i32, i32, i32
  }
  func.func @transform_10(%arg0: i32, %arg1: i32) -> (i32, i32, i32) {
    %c0_i32 = arith.constant 0 : i32
    %c0_i32_0 = arith.constant 0 : i32
    return %arg0, %c0_i32, %arg1 : i32, i32, i32
  }
}

</mosaic_0001>

<bundles_post_ra>
// kernel: wavenet_conv.2
= control target key start
LH: loop header
LB: loop body
LE: loop exit
PB: predicated region body
PF: predicated region fallthrough
CT: control target
= control target key end

     0   :  { %vm89_vm0 = vcmask 7168   ;;  %vm91_vm1 = vcmask 15360   ;;  %s124_s0 = inlined_call_operand.vmem [shape: bf16[2,8,256], index: 0, kind: input, shape index: {}]   ;;  %s125_s1 = inlined_call_operand.vmem [shape: f32[1,8,2], index: 1, kind: output, shape index: {}]  }
   0x1   :  { %v27_v0 = vld [vmem:[%s124_s0] sm:$0xf]  ;;  %v29_v1 = vld [vmem:[%s124_s0 + $0x8] sm:$0xf] }
   0x2   :  { %28 = vst [vmem:[#allocation3] sm:$0xf] %v27_v0 }
   0x3   :  { %30 = vst [vmem:[#allocation3 + $0x4] sm:$0xf] %v29_v1 }
   0xa   :  { %v102_v2 = vld [vmem:[#allocation3] sm:$0xff]  }
   0xb   :  { %v103_v3 = vunpack.c.l.bf16 %v102_v2  ;;  %v104_v4 = vunpack.c.h.bf16 %v102_v2 }
   0xd   :  { %v69_v5 = vadd.f32 %v104_v4, %v103_v3  ;;  %v70_v6 = vmul.f32 %v103_v3, %v103_v3  ;;  %v71_v7 = vmul.f32 %v104_v4, %v104_v4 }
   0xf   :  { %84 = vadd.xlane.f32.xlu0 %v69_v5  ;;  %v72_v8 = vadd.f32 %v71_v7, %v70_v6 }
  0x17   :  { %87 = vadd.xlane.f32.xlu0 %v72_v8 }
  0x82   :  { %v85_v9 = vpop.xlane.xlu0 %84 }
  0x8a   :  { %v88_v10 = vpop.xlane.xlu0 %87 }
  0x8b   :  { %v90_v11 = vsel %vm89_vm0, %v85_v9, %v88_v10 }
  0x8c   :  { %92 = vst.msk [vmem:[%s125_s1] sm:$0xff] %vm91_vm1, %v90_v11 }

// kernel: wavenet_conv.3
= control target key start
LH: loop header
LB: loop body
LE: loop exit
PB: predicated region body
PF: predicated region fallthrough
CT: control target
= control target key end

     0   :  { %s1354_s0 = inlined_call_operand.vmem [shape: bf16[2,8,256], index: 0, kind: input, shape index: {}, may-alias: {0,1}]   ;;  %s1355_s1 = inlined_call_operand.vmem [shape: bf16[2,8,256], index: 1, kind: input, shape index: {}, may-alias: {0,1}]   ;;  %s1356_s2 = inlined_call_operand.vmem [shape: f32[2,16,128], index: 2, kind: input, shape index: {}]   ;;  %s1357_s3 = inlined_call_operand.vmem [shape: bf16[3,16,8], index: 3, kind: input, shape index: {}]   ;;  %s1358_s4 = inlined_call_operand.vmem [shape: f32[16,1], index: 4, kind: input, shape index: {}]   ;;  %s1359_s5 = inlined_call_operand.vmem [shape: bf16[24,8], index: 5, kind: input, shape index: {}]   ;;  %s1360_s6 = inlined_call_operand.vmem [shape: f32[24,1], index: 6, kind: input, shape index: {}]   ;;  %s1361_s7 = inlined_call_operand.vmem [shape: f32[8,1], index: 7, kind: input, shape index: {}]   ;;  %s1362_s8 = inlined_call_operand.vmem [shape: f32[8,1], index: 8, kind: input, shape index: {}]   ;;  %s1363_s9 = inlined_call_operand.hbm [shape: f32[2,8,128], index: 9, kind: output, shape index: {0}]   ;;  %s1364_s10 = inlined_call_operand.hbm [shape: f32[2,16,128], index: 10, kind: output, shape index: {1}]  }
   0x1   :  { %1367 = sst [smem:[#allocation11_spill]] %s1354_s0 }
   0x2   :  { %1368 = sst [smem:[#allocation12_spill]] %s1355_s1 }
   0x3   :  { %1369 = sst [smem:[#allocation13_spill]] %s1357_s3 }
   0x4   :  { %16 = vsyncpa [#allocation3], 0 }
   0x5   :  { %18 = vsyncpa [#allocation3 + $0x1], 0 }
   0x6   :  { %19 = vsyncpa [#allocation5], 0 }
   0x7   :  { %21 = vsyncpa [#allocation5 + $0x1], 0  ;;  %s1178_s13 = smov 0   ;;  %s1180_s14 = smov 0  }
   0x8   :  { %s1182_s15 = smov 0   ;;  %s1184_s16 = smov 0  }
   0x9   :  { %s1186_s17 = smov 0   ;;  %s1188_s18 = smov 0  }
   0xa LB: > { %1370 = sst [smem:[#allocation8_spill]] %s1112_s17  ;;  %s876_s19 = sadd.s32 4294967295, %s1116_s18   ;;  %s1116_s18 = sphi %s1188_s18, %s27_s18   ;;  %s1112_s17 = sphi %s1186_s17, %s1380_s17   ;;  %s1108_s16 = sphi %s1184_s16, %s1379_s16   ;;  %s1104_s15 = sphi %s1182_s15, %s1383_s15   ;;  %s1100_s14 = sphi %s1180_s14, %s1382_s14   ;;  %s1096_s13 = sphi %s1178_s13, %s1381_s13  }
   0xb   : > { %s877_s20 = sadd.s32 4294967294, %s1116_s18   ;;  %s39_s21 = sadd.s32 1, %s1112_s17 }
   0xc   : > { %s260_s22 = sadd.s32 1, %s1104_s15  ;;  %p41_p0 = scmp.ge.s32.totalorder %s39_s21, 2 }
   0xd   : > { %p270_p1 = scmp.ne.s32.totalorder %s1104_s15, %s1100_s14  ;;  %p271_p2 = scmp.eq.s32.totalorder %s876_s19, 1 }
   0xe   : > { %p276_p3 = scmp.ne.s32.totalorder %s1100_s14, %s1096_s13  ;;  %s1385_s21 = smov (%p41_p0, %s39_s21), 0 }
   0xf   : > { %1371 = sst [smem:[#allocation9_spill]] %s1385_s21  ;;  %p1218_p4 = por %p271_p2, %p270_p1 }
  0x10   : > { %p277_p5 = scmp.eq.s32.totalorder %s877_s20, 1  ;;  %s255_s24 = ssub.s32 %s1112_s17, %s1385_s21 }
  0x11   : > { %p880_p6 = scmp.ge.s32.totalorder %s1116_s18, 1  ;;  %p258_p7 = scmp.eq.s32.totalorder %s255_s24, 0 }
  0x12   : > { %p1225_p8 = por %p277_p5, %p276_p3  ;;  %p376_p9 = scmp.lt.s32.totalorder %s1116_s18, 3 }
  0x13   : > { %s1231_s26 = scalar_select %p258_p7, %s1104_s15, %s260_s22  }
  0x14   : > { %p377_p10 = pnand %p880_p6, %p376_p9 }
  0x15   : > { %1374 = sst [smem:[#allocation10_spill]] %s1231_s26  ;;  %p439_p11 = scmp.lt.s32.totalorder (!%p377_p10), %s1108_s16, 1 }
  0x16   : > { %380 = sbr.rel (%p377_p10) target bundleno = 500 (0x1f4), region = 56  ;;  %s1375_s0 = sld [smem:[#allocation11_spill]] (!%p377_p10) }
  0x17   : > { %s1376_s1 = sld [smem:[#allocation12_spill]] (!%p377_p10)  ;;  %s1119_s17 = smov (!%p377_p10), 126  }
  0x18   : > { %s1120_s26 = smov (!%p377_p10), 124   ;;  %s1377_s3 = sld [smem:[#allocation13_spill]] (!%p377_p10) }
  0x1b   : > { %v577_v0 = vld [vmem:[%s1358_s4 + $0x8] sm:$0xff]  ;;  %v1118_v1 = vmov 0   ;;  %s1238_s29 = scalar_select %p439_p11, %s1108_s16, 1  ;;  %v576_v4 = vld [vmem:[%s1358_s4] sm:$0xff]  ;;  %vm497_vm0 = vcmask 1043456   ;;  %vm493_vm1 = vcmask 64512  }
  0x1c   : > { %998 = vset.pattern.permute.xlu0 %v1118_v1  ;;  %997 = vset.pattern.permute.xlu2 %v1118_v1  ;;  %v616_v9 = vld [vmem:[%s1360_s6 + $0x8] sm:$0xff]  ;;  %v676_v10 = vld [vmem:[%s1362_s8] sm:$0xff]  ;;  %vm483_vm2 = vcmask 1031168   ;;  %vm546_vm3 = vcmask 1014784   ;;  %v617_v51 = vld [vmem:[%s1360_s6 + $0x10] sm:$0xff] }
  0x1d   : > { %585 = vperm.xlu2 %997, %v577_v0   ;;  %999 = vset.pattern.permute.xlu1 %v1118_v1  ;;  %s922_s30 = sshll.u32 %s1238_s29, 3  ;;  %v669_v11 = vld [vmem:[%s1361_s7] sm:$0xff]  ;;  %v613_v58 = vld [vmem:[%s1359_s5 + $0x8] sm:$0xf] }
  0x1e   : > { %s446_s19 = scalar_lea.vmem %s1375_s0, %s922_s30  ;;  %s924_s20 = sadd.s32 4, %s922_s30  ;;  %v926_v13 = vld [vmem:[%s1377_s3] sm:$0xff]  ;;  %v927_v22 = vld [vmem:[%s1377_s3 + $0x8] sm:$0xff]  ;;  %v928_v23 = vld [vmem:[%s1377_s3 + $0x10] sm:$0xff]  ;;  %v638_v59 = vunpack.c.l.b16 %v613_v58 }
  0x1f   : > { %v466_v2 = vld [vmem:[%s446_s19] sm:$0xf]  ;;  %s455_s27 = scalar_lea.vmem %s1376_s1, %s924_s20  ;;  %s925_s20 = sshll.u32 %s1238_s29, 4 }
  0x20   : > { %v474_v3 = vunpack.c.l.b16 %v466_v2  ;;  %v467_v5 = vld [vmem:[%s455_s27] sm:$0xf]  ;;  %v523_v12 = vsel %vm497_vm0, %v466_v2, 0  ;;  %v640_v60 = vpack.c.b16 %v638_v59, %v638_v59  ;;  %s464_s0 = scalar_lea.vmem %s1356_s2, %s925_s20  ;;  %s1026_s29 = scalar_lea.hbm %s1363_s9, 16 }
  0x21   : > { %v479_v7 = vunpack.c.l.b16 %v467_v5  ;;  %532 = vmatpush.bf16.msra.mxu1 %v523_v12  ;;  %v615_v44 = vld [vmem:[%s1360_s6] sm:$0xff] }
  0x22   : > { %v475_v6 = vpack.c.b16 %v474_v3, %v474_v3  ;;  %v929_v57 = vld [vmem:[%s1359_s5] sm:$0xff] }
  0x23   : > { %v480_v8 = vpack.c.b16 %v479_v7, %v479_v7 }
  0x24   : > { %476 = vrot.lane.b32.xlu1 %v475_v6, %s1119_s17  ;;  %542 = vrot.lane.b32.xlu0 %v475_v6, %s1120_s26 }
  0x25   : > { %580 = vperm.xlu2 %997, %v576_v4   ;;  %900 = vmatmul.msk.bf16.vlgmr.msra.gmra.mxu1 %vm493_vm1, %v926_v13 }
  0x2c   : > { %481 = vrot.lane.b32.xlu1 %v480_v8, %s1119_s17  ;;  %544 = vrot.lane.b32.xlu0 %v480_v8, %s1120_s26  ;;  %s1293_s17 = sand.u32 1, %s1100_s14   ;;  %s917_s26 = sshll.u32 %s1108_s16, 3 }
  0x2d   : > { %625 = vperm.xlu2 %997, %v616_v9   ;;  %s881_s27 = sshll.u32 %s1293_s17, 3  ;;  %s708_s11 = scalar_lea.hbm %s1363_s9, %s917_s26 }
  0x2e   : > { %s431_s12 = scalar_lea.vmem [#allocation2], %s881_s27  ;;  %s712_s21 = sshll.u32 %s708_s11, 4  ;;  %s713_s21 = int_to_ptr.hbm [resolvable:$true] %s712_s21 }
  0x2f   : > { %s710_s19 = sshll.u32 %s431_s12, 4  ;;  %s692_s28 = scalar_lea.sflag [#allocation3], %s1293_s17  ;;  %s711_s19 = int_to_ptr.vmem [resolvable:$true] %s710_s19 }
  0x30   : > { %s1020_s26 = sshra.s32 %s713_s21, 4  ;;  %s1021_s26 = int_to_ptr.hbm [resolvable:$true] %s1020_s26 }
  0x31   : > { %s1022_s30 = scalar_lea.hbm %s1021_s26, 8  ;;  %p1027_p1 = scmp.lt.s32.totalorder %s1021_s26, %s1363_s9 }
  0x32   : > { %p1023_p12 = scmp.ne.s32.totalorder %s1021_s26, %s1022_s30  ;;  %p1028_p2 = scmp.lt.s32.totalorder %s1026_s29, %s1022_s30 }
  0x34   : > { %672 = vperm.xlu0 %998, %v669_v11   ;;  %620 = vperm.xlu1 %999, %v615_v44   ;;  %p1024_p13 = pnand %p1023_p12, %p1218_p4  ;;  %p1029_p3 = por %p1028_p2, %p1027_p1 }
  0x35   : > { %679 = vperm.xlu2 %997, %v676_v10  }
  0x36   : > { %p1025_p0 = pneg %p1024_p13 }
  0x38   : > { %p1030_p5 = pnand %p1029_p3, %p1025_p0 }
  0x3c   : > { %630 = vperm.xlu1 %999, %v617_v51  }
  0x77   : > { %v586_v32 = vpop.permute.xlu2 %585 }
  0x7f   : > { %v581_v39 = vpop.permute.xlu2 %580 }
  0x87   : > { %v626_v61 = vpop.permute.xlu2 %625 }
  0x8f   : > { %v680_v1 = vpop.permute.xlu2 %679 }
  0x96   : > { %v477_v14 = vpop.permute.xlu1 %476  ;;  %v543_v15 = vpop.permute.xlu0 %542 }
  0x9e   : > { %v482_v16 = vpop.permute.xlu1 %481  ;;  %v545_v17 = vpop.permute.xlu0 %544 }
  0x9f   : > { %v1264_v18 = vsel %vm483_vm2, %v477_v14, %v482_v16  ;;  %v549_v19 = vsel %vm546_vm3, %v543_v15, %v545_v17 }
  0xa0   : > { %v498_v20 = vsel %vm497_vm0, %v1264_v18, 0  ;;  %v558_v21 = vsel %vm497_vm0, %v549_v19, 0  ;;  %v668_v63 = vunpack.c.l.bf16 %v1264_v18 }
  0xa1   : > { %507 = vmatpush.bf16.msra.mxu0 %v498_v20  ;;  %567 = vmatpush.bf16.msra.mxu2 %v558_v21 }
  0xa2   : > { %v534_v25 = vpop.f32.mrf.mxu1 }
  0xa4   : > { %895 = vmatmul.msk.bf16.vlgmr.msra.gmra.mxu0 %vm493_vm1, %v927_v22  ;;  %907 = vmatmul.msk.bf16.vlgmr.msra.gmra.mxu2 %vm493_vm1, %v928_v23 }
  0xa6   : > { %v673_v62 = vpop.permute.xlu0 %672  ;;  %v621_v2 = vpop.permute.xlu1 %620 }
  0xa7   : > { %v675_v0 = vmul.f32 %v673_v62, %v668_v63 }
  0xa9   : > { %v682_v4 = vadd.f32 %v680_v1, %v675_v0 }
  0xaa   : > { %v536_v28 = vpop.f32.mrf.mxu1 }
 0x121   : > { %v509_v24 = vpop.f32.mrf.mxu0 }
 0x122   : > { %v535_v36 = vadd.f32 %v534_v25, %v509_v24 }
 0x127   : > { %v569_v26 = vpop.f32.mrf.mxu2 }
 0x128   : > { %v574_v38 = vadd.f32 %v569_v26, %v535_v36 }
 0x129   : > { %v511_v27 = vpop.f32.mrf.mxu0 }
 0x12a   : > { %v537_v29 = vadd.f32 %v536_v28, %v511_v27  ;;  %v588_v41 = vadd.f32 %v581_v39, %v574_v38 }
 0x12f   : > { %v571_v30 = vpop.f32.mrf.mxu2 }
 0x130   : > { %v575_v31 = vadd.f32 %v571_v30, %v537_v29 }
 0x132   : > { %v589_v33 = vadd.f32 %v586_v32, %v575_v31 }
 0x134   : > { %v908_v34 = vmul.f32 -1.442695, %v589_v33 }
 0x136   : > { %1000 = vpow2.f32 %v908_v34 }
 0x13c   : > { %v1001_v35 = vpop.eup %1000 }
 0x13d   : > { %v594_v37 = vadd.f32 1.0, %v1001_v35 }
 0x13f   : > { %1002 = vrcp.f32 %v594_v37  ;;  %v606_v45 = vand.u32 2147483648, %v594_v37  ;;  %v604_v47 = vand.u32 2147483647, %v594_v37  ;;  %vm600_vm5 = vweird.f32 %v594_v37 }
 0x140   : > { %1004 = vtanh.f32 %v588_v41 }
 0x141   : > { %v607_v49 = vor.u32 1.1754944e-38, %v606_v45  ;;  %vm605_vm7 = vcmp.eq.f32.partialorder %v604_v47, 8.507059e+37 }
 0x145   : > { %v1003_v40 = vpop.eup %1002 }
 0x146   : > { %v596_v42 = vmul.f32 %v1003_v40, %v594_v37  ;;  %vm601_vm4 = vweird.f32 %v1003_v40  ;;  %v1005_v52 = vpop.eup %1004 }
 0x147   : > { %vm602_vm6 = vmor %vm600_vm5, %vm601_vm4 }
 0x148   : > { %v597_v43 = vsub.f32 1.0, %v596_v42 }
 0x14a   : > { %v598_v46 = vmul.f32 %v1003_v40, %v597_v43 }
 0x14c   : > { %v599_v48 = vadd.f32 %v1003_v40, %v598_v46 }
 0x14e   : > { %v603_v50 = vsel %vm602_vm6, %v1003_v40, %v599_v48 }
 0x14f   : > { %v608_v53 = vsel %vm605_vm7, %v607_v49, %v603_v50 }
 0x150   : > { %v610_v54 = vmul.f32 %v1005_v52, %v608_v53 }
 0x152   : > { %v614_v55 = vpack.c.bf16 %v610_v54, %v610_v54 }
 0x154   : > { %v648_v56 = vsel %vm497_vm0, %v614_v55, 0 }
 0x155   : > { %657 = vmatpush.bf16.msra.mxu3 %v648_v56 }
 0x158   : > { %913 = vmatmul.msk.bf16.vlgmr.msra.gmra.mxu3 %vm493_vm1, %v929_v57 }
 0x168   : > { %914 = vmatmul.msk.bf16.gmra.mxu3 %vm493_vm1, %v640_v60 }
 0x1db   : > { %v659_v3 = vpop.f32.mrf.mxu3 }
 0x1dc   : > { %v660_v5 = vadd.f32 %v659_v3, %v621_v2 }
 0x1de   : > { %v683_v6 = vadd.f32 %v682_v4, %v660_v5 }
 0x1e0   : > { %684 = vst [vmem:[%s431_s12] sm:$0xff] %v683_v6 }
 0x1e1   : > { %1033 = shalt.err (!%p1030_p5)
}
 0x1e2   : > { %932 = dma.vmem_to_hbm [thread:$0]  (%p1218_p4), %s711_s19, 128, %s713_s21, %s692_s28   ;;  %v685_v8 = vld [vmem:[%s464_s0] sm:$0xff]  ;;  %v631_v11 = vpop.permute.xlu1 %630  ;;  %v686_v13 = vld [vmem:[%s464_s0 + $0x8] sm:$0xff] }
 0x1e3   : > { %s882_s12 = sshll.u32 %s1293_s17, 4  ;;  %v661_v7 = vpop.f32.mrf.mxu3  ;;  %s930_s20 = sshll.u32 %s1108_s16, 4 }
 0x1e4   : > { %v662_v9 = vadd.f32 %v661_v7, %v626_v61  ;;  %s438_s22 = scalar_lea.vmem [#allocation4], %s882_s12  ;;  %s724_s24 = scalar_lea.hbm %s1364_s10, %s930_s20 }
 0x1e5   : > { %s725_s26 = sshll.u32 %s438_s22, 4  ;;  %s727_s30 = sshll.u32 %s724_s24, 4  ;;  %s726_s26 = int_to_ptr.vmem [resolvable:$true] %s725_s26  ;;  %s728_s30 = int_to_ptr.hbm [resolvable:$true] %s727_s30 }
 0x1e6   : > { %v687_v10 = vadd.f32 %v685_v8, %v662_v9  ;;  %s697_s19 = scalar_lea.sflag [#allocation5], %s1293_s17  ;;  %s1048_s16 = sshra.s32 %s728_s30, 4  ;;  %s1049_s16 = int_to_ptr.hbm [resolvable:$true] %s1048_s16 }
 0x1e7   : > { %s1050_s21 = scalar_lea.hbm %s1049_s16, 16  ;;  %s1054_s11 = scalar_lea.hbm %s1364_s10, 32 }
 0x1e8   : > { %689 = vst [vmem:[%s438_s22] sm:$0xff] %v687_v10  ;;  %p1051_p6 = scmp.ne.s32.totalorder %s1049_s16, %s1050_s21  ;;  %p1055_p10 = scmp.lt.s32.totalorder %s1049_s16, %s1364_s10 }
 0x1e9   : > { %p1056_p11 = scmp.lt.s32.totalorder %s1054_s11, %s1050_s21 }
 0x1ea   : > { %p1052_p7 = pnand %p1051_p6, %p1218_p4 }
 0x1eb   : > { %v664_v12 = vpop.f32.mrf.mxu3  ;;  %p1057_p12 = por %p1056_p11, %p1055_p10 }
 0x1ec   : > { %v665_v14 = vadd.f32 %v664_v12, %v631_v11  ;;  %p1053_p9 = pneg %p1052_p7 }
 0x1ee   : > { %v688_v15 = vadd.f32 %v686_v13, %v665_v14  ;;  %p1058_p13 = pnand %p1057_p12, %p1053_p9 }
 0x1f0   : > { %690 = vst [vmem:[%s438_s22 + $0x8] sm:$0xff] %v688_v15 }
 0x1f1   : > { %1061 = shalt.err (!%p1058_p13)
}
 0x1f2   : > { %s1121_s17 = smov 128   ;;  %s1122_s12 = smov 8  }
 0x1f3   : > { %933 = dma.vmem_to_hbm [thread:$0]  (%p1218_p4), %s726_s26, 256, %s728_s30, %s697_s19, %s1121_s17, %s1121_s17, %s1122_s12   ;;  %v666_v16 = vpop.f32.mrf.mxu3 }
 0x1f4 PF: > { %p943_p0 = scmp.ge.s32.totalorder %s1116_s18, 2  ;;  %s742_s20 = sand.u32 1, %s1096_s13  }
 0x1f5   : > { %s743_s22 = scalar_lea.sflag [#allocation3], %s742_s20 }
 0x1f6   : > { %p937_p1 = pnand %p943_p0, %p1225_p8 }
 0x1f8   : > { %p938_p2 = pneg %p937_p1 }
 0x1fa   : > { %1087 = dma.done.wait (%p938_p2), %s743_s22, 128  }
 0x1fb   : > { %1089 = vsyncadd (%p938_p2), %s743_s22, 4294967168  ;;  %s753_s1 = scalar_lea.sflag [#allocation5], %s742_s20 }
 0x1fc   : > { %1091 = dma.done.wait (%p938_p2), %s753_s1, 256  }
 0x1fd   : > { %1093 = vsyncadd (%p938_p2), %s753_s1, 4294967040  ;;  %s27_s18 = sadd.s32 1, %s1116_s18   ;;  %s1378_s23 = sld [smem:[#allocation10_spill]] }
 0x1fe   : > { %p24_p3 = scmp.ge.s32.totalorder %s27_s18, 4   ;;  %s1379_s16 = sld [smem:[#allocation8_spill]] }
 0x1ff   : > { %s1380_s17 = sld [smem:[#allocation9_spill]]  ;;  %s1381_s13 = smov %s1100_s14 }
 0x200   : > { %s1382_s14 = smov %s1104_s15  ;;  %26 = sbr.rel (!%p24_p3) target bundleno = 10 (0xa), region = 116 }
 0x203   : > { %s1383_s15 = smov %s1378_s23 }
 0x205   :  { %759 = vsyncpa [#allocation3], 1 }
 0x206   :  { %761 = vsyncpa [#allocation3 + $0x1], 1 }
 0x207   :  { %762 = vsyncpa [#allocation5], 1 }
 0x208   :  { %764 = vsyncpa [#allocation5 + $0x1], 1 }

</bundles_post_ra>
